<compile_context>
chip_gen: v5e
topology: v5e:2x2
jax: 0.10.0
libtpu: 0.0.40
codegen_flags: <defaults>
</compile_context>

<pallas_src>
import functools

import jax
import jax.numpy as jnp
from jax.experimental import pallas as pl
from jax.experimental.pallas import tpu as pltpu

LANE = 128      # TPU lane width; the hidden dim lives zero-padded in these lanes
SUBLANE = 8


def _round_up(x, m):
    return (x + m - 1) // m * m


def _row_layout(d_s, d_d, d_c):
    """Sublane(8)-aligned row offsets inside the packed parameter tile."""
    r_d = _round_up(d_s, SUBLANE)            # start of W1 rows for discrete_action
    r_c = r_d + _round_up(d_d, SUBLANE)      # start of W1 rows for continuous_action
    r_b1 = r_c + _round_up(d_c, SUBLANE)     # b1 row  (8-aligned)
    r_w3 = r_b1 + SUBLANE                    # w3 row  (8-aligned)
    rows = r_w3 + SUBLANE
    return r_d, r_c, r_b1, r_w3, rows


def _critic_kernel(xs_ref, xd_ref, xc_ref, p_ref, b3_ref, o_ref, *,
                   d_s, d_d, d_c, r_d, r_c, r_b1, r_w3):
    # Activations may arrive as bf16 (halved HBM traffic); compute in f32.
    xs = xs_ref[...].astype(jnp.float32)
    xd = xd_ref[...].astype(jnp.float32)
    xc = xc_ref[...].astype(jnp.float32)

    # --- l1 with the concat fused away: W1 split into three row blocks of the
    # packed parameter tile (MXU, f32 accumulation), then bias + ReLU (VPU). --
    h = jnp.dot(xs, p_ref[0:d_s, :], preferred_element_type=jnp.float32)
    h = h + jnp.dot(xd, p_ref[r_d:r_d + d_d, :],
                    preferred_element_type=jnp.float32)
    h = h + jnp.dot(xc, p_ref[r_c:r_c + d_c, :],
                    preferred_element_type=jnp.float32)
    h = jnp.maximum(h + p_ref[r_b1:r_b1 + 1, :], 0.0)         # + b1, ReLU

    # --- l3: VPU multiply + lane reduction (padded hidden lanes are exactly
    # zero, so they contribute nothing); b3 comes from SMEM as a scalar. ------
    w3_row = p_ref[r_w3:r_w3 + 1, :]                          # [1, LANE]
    q = jnp.sum(h * w3_row, axis=-1) + b3_ref[0, 0]           # [tile_b]
    # Lane-dense store: one full-lane row per tile instead of a masked column.
    o_ref[0, :] = q.astype(o_ref.dtype)


def pack_critic_params(params, d_s, d_d, d_c):
    """Pack W1 (split per input), b1, w3 into one [rows, 128] f32 tile with
    8-row-aligned scalar rows; b3 is returned separately as a (1,1) SMEM scalar."""
    w1, b1, w3, b3 = params["w1"], params["b1"], params["w3"], params["b3"]
    h = w1.shape[1]
    assert w1.shape[0] == d_s + d_d + d_c
    # TODO(synk): tile the hidden dim across multiple lane blocks for hidden > 128.
    assert h <= LANE, "hidden size must fit one lane tile (<=128)"
    r_d, r_c, r_b1, r_w3, rows = _row_layout(d_s, d_d, d_c)

    p = jnp.zeros((rows, LANE), jnp.float32)
    p = p.at[0:d_s, 0:h].set(w1[0:d_s])
    p = p.at[r_d:r_d + d_d, 0:h].set(w1[d_s:d_s + d_d])
    p = p.at[r_c:r_c + d_c, 0:h].set(w1[d_s + d_d:])
    p = p.at[r_b1, 0:h].set(b1.reshape(h))
    p = p.at[r_w3, 0:h].set(w3.reshape(h))
    b3_smem = jnp.asarray(b3, jnp.float32).reshape(1, 1)
    return p, b3_smem


def _choose_tile_b(b, max_tile_b):
    # Small batches: one grid step (below the ~0.35 us/step overhead floor a
    # hand kernel cannot win anyway).
    if b <= 256:
        return b
    # Otherwise: at least 2 grid steps (both v7x TensorCores busy), a multiple
    # of 128 (lane-dense output block + (8,128) rule), capped so the
    # double-buffered, lane-padded input blocks stay well inside VMEM.
    t = _round_up((b + 1) // 2, LANE)
    return min(t, max_tile_b)


def critic_forward(state, discrete_action, continuous_action, packed_params, b3,
                   *, dims, max_tile_b=4096):
    """Fused Pallas forward.  One pallas_call; batch-tiled grid; parameters
    stay resident in VMEM across all batch tiles; lane-dense (1, B) output."""
    d_s, d_d, d_c = dims
    b = state.shape[0]
    r_d, r_c, r_b1, r_w3, rows = _row_layout(d_s, d_d, d_c)

    tile_b = _choose_tile_b(b, max_tile_b)
    grid = (pl.cdiv(b, tile_b),)

    kernel = functools.partial(_critic_kernel, d_s=d_s, d_d=d_d, d_c=d_c,
                               r_d=r_d, r_c=r_c, r_b1=r_b1, r_w3=r_w3)

    out = pl.pallas_call(
        kernel,
        out_shape=jax.ShapeDtypeStruct((1, b), jnp.float32),
        grid=grid,
        in_specs=[
            pl.BlockSpec((tile_b, d_s), lambda i: (i, 0)),
            pl.BlockSpec((tile_b, d_d), lambda i: (i, 0)),
            pl.BlockSpec((tile_b, d_c), lambda i: (i, 0)),
            # single packed parameter tile, resident across all batch tiles
            pl.BlockSpec((rows, LANE), lambda i: (0, 0)),
            # b3 scalar lives in SMEM (no lane/sublane extraction per step)
            pl.BlockSpec(memory_space=pltpu.MemorySpace.SMEM),
        ],
        # Lane-dense output row: full vst per tile, no 128x-padded out buffer.
        out_specs=pl.BlockSpec((1, tile_b), lambda i: (0, i)),
        compiler_params=pltpu.CompilerParams(
            dimension_semantics=("parallel",),     # v7x dual-TC batch sharding
            vmem_limit_bytes=32 * 1024 * 1024,     # sized for tile_b<=4096, fits v7x
        ),
    )(state, discrete_action, continuous_action, packed_params, b3)

    # (1, B) and (B, 1) share the same row-major layout: free reshape back.
    return out.reshape(b, 1)


def init_critic_params(key, state_dim, num_discrete, num_continuous,
                       hidden_sizes=(32, 32)):
    """Deterministic PyTorch-style (uniform +-1/sqrt(fan_in)) init.
    Weights are stored as [in, out] (transposed vs. torch.nn.Linear)."""
    h0, h1 = hidden_sizes
    # forward() skips l2, so it is only well-formed when h0 == h1
    assert h0 == h1, "forward() skips l2: hidden_sizes[0] must equal hidden_sizes[1]"
    in_dim = state_dim + num_discrete + num_continuous
    k1, k2, k3, k4, k5, k6 = jax.random.split(key, 6)

    def lin(kw, kb, fan_in, fan_out):
        bound = 1.0 / jnp.sqrt(jnp.float32(fan_in))
        w = jax.random.uniform(kw, (fan_in, fan_out), jnp.float32, -bound, bound)
        b = jax.random.uniform(kb, (1, fan_out), jnp.float32, -bound, bound)
        return w, b

    w1, b1 = lin(k1, k2, in_dim, h0)
    w2, b2 = lin(k3, k4, h0, h1)      # l2: created but unused by forward()
    w3, b3 = lin(k5, k6, h1, 1)
    return {"w1": w1, "b1": b1, "w2": w2, "b2": b2, "w3": w3, "b3": b3}


def critic_reference(state, discrete_action, continuous_action, params):
    x = jnp.concatenate([state, discrete_action, continuous_action], axis=1)
    h = jnp.maximum(x @ params["w1"] + params["b1"], 0.0)
    return h @ params["w3"] + params["b3"]


if __name__ == "__main__":
    state_dim = 16
    num_discrete_actions = 4
    num_continuous_actions = 4
    hidden_sizes = (32, 32)   # must be equal because forward skips l2
    dims = (state_dim, num_discrete_actions, num_continuous_actions)

    key = jax.random.PRNGKey(0)
    kp, kdata = jax.random.split(key)

    params = init_critic_params(kp, state_dim, num_discrete_actions,
                                num_continuous_actions, hidden_sizes)
    packed, b3 = pack_critic_params(params, *dims)

    ok = True
    # (1) tiny batch (single grid step), (2) batch that exercises a multi-step
    #     grid, resident params, lane-dense multi-block output and a ragged
    #     last tile.
    for batch in (8, 1000):
        ks, kd, kc, kdata = jax.random.split(kdata, 4)
        state = jax.random.normal(ks, (batch, state_dim), jnp.float32)
        discrete_action = jax.random.normal(kd, (batch, num_discrete_actions),
                                            jnp.float32)
        continuous_action = jax.random.normal(kc, (batch, num_continuous_actions),
                                              jnp.float32)

        q = critic_forward(state, discrete_action, continuous_action,
                           packed, b3, dims=dims)
        q = jax.block_until_ready(q)
        q_ref = critic_reference(state, discrete_action, continuous_action, params)

        ok = ok and (q.shape == (batch, 1))
        ok = ok and bool(jnp.allclose(q, q_ref, atol=1e-4, rtol=1e-4))

    assert ok
    print("KERNEL_OK")
</pallas_src>

<mosaic_0001>
module attributes {stable_mosaic.version = 11 : i64} {
  func.func @_critic_kernel(%arg0: i32, %arg1: memref<8x16xf32, #tpu.memory_space<vmem>>, %arg2: memref<8x4xf32, #tpu.memory_space<vmem>>, %arg3: memref<8x4xf32, #tpu.memory_space<vmem>>, %arg4: memref<48x128xf32, #tpu.memory_space<vmem>>, %arg5: memref<1x1xf32, #tpu.memory_space<smem>>, %arg6: memref<1x8xf32, #tpu.memory_space<vmem>>) attributes {dimension_semantics = [#tpu.dimension_semantics<parallel>], iteration_bounds = array<i64: 1>, scalar_prefetch = 0 : i64, scratch_operands = 0 : i64, tpu.core_type = #tpu.core_type<tc>, window_params = [{transform_indices = @transform_0, window_bounds = array<i64: 8, 16>}, {transform_indices = @transform_1, window_bounds = array<i64: 8, 4>}, {transform_indices = @transform_2, window_bounds = array<i64: 8, 4>}, {pipeline_mode = #tpu.pipeline_mode<synchronous>, transform_indices = @transform_3, window_bounds = array<i64: 48, 128>}, {transform_indices = @transform_4, window_bounds = array<i64: 1, 1>}, {transform_indices = @transform_5, window_bounds = array<i64: 1, 8>}]} {
    %c0 = arith.constant 0 : index
    %c0_0 = arith.constant 0 : index
    %0 = vector.load %arg1[%c0, %c0_0] : memref<8x16xf32, #tpu.memory_space<vmem>>, vector<8x16xf32>
    %c0_1 = arith.constant 0 : index
    %c0_2 = arith.constant 0 : index
    %1 = vector.load %arg2[%c0_1, %c0_2] : memref<8x4xf32, #tpu.memory_space<vmem>>, vector<8x4xf32>
    %c0_3 = arith.constant 0 : index
    %c0_4 = arith.constant 0 : index
    %2 = vector.load %arg3[%c0_3, %c0_4] : memref<8x4xf32, #tpu.memory_space<vmem>>, vector<8x4xf32>
    %c0_5 = arith.constant 0 : index
    %c0_6 = arith.constant 0 : index
    %3 = vector.load %arg4[%c0_5, %c0_6] : memref<48x128xf32, #tpu.memory_space<vmem>>, vector<16x128xf32>
    %cst = arith.constant dense<0.000000e+00> : vector<8x128xf32>
    %4 = tpu.matmul %0, %3, %cst {dimension_numbers = #tpu.dot_dimension_numbers<[1], [0], [0], [1], [0, 0, 1, 1], [], []>} : vector<8x16xf32>, vector<16x128xf32>, vector<8x128xf32> -> vector<8x128xf32>
    %c16 = arith.constant 16 : index
    %c0_7 = arith.constant 0 : index
    %5 = vector.load %arg4[%c16, %c0_7] : memref<48x128xf32, #tpu.memory_space<vmem>>, vector<4x128xf32>
    %cst_8 = arith.constant dense<0.000000e+00> : vector<8x128xf32>
    %6 = tpu.matmul %1, %5, %cst_8 {dimension_numbers = #tpu.dot_dimension_numbers<[1], [0], [0], [1], [0, 0, 1, 1], [], []>} : vector<8x4xf32>, vector<4x128xf32>, vector<8x128xf32> -> vector<8x128xf32>
    %7 = arith.addf %4, %6 : vector<8x128xf32>
    %c24 = arith.constant 24 : index
    %c0_9 = arith.constant 0 : index
    %8 = vector.load %arg4[%c24, %c0_9] : memref<48x128xf32, #tpu.memory_space<vmem>>, vector<4x128xf32>
    %cst_10 = arith.constant dense<0.000000e+00> : vector<8x128xf32>
    %9 = tpu.matmul %2, %8, %cst_10 {dimension_numbers = #tpu.dot_dimension_numbers<[1], [0], [0], [1], [0, 0, 1, 1], [], []>} : vector<8x4xf32>, vector<4x128xf32>, vector<8x128xf32> -> vector<8x128xf32>
    %10 = arith.addf %7, %9 : vector<8x128xf32>
    %c32 = arith.constant 32 : index
    %c0_11 = arith.constant 0 : index
    %11 = vector.load %arg4[%c32, %c0_11] : memref<48x128xf32, #tpu.memory_space<vmem>>, vector<1x128xf32>
    %12 = vector.broadcast %11 : vector<1x128xf32> to vector<8x128xf32>
    %13 = arith.addf %10, %12 : vector<8x128xf32>
    %cst_12 = arith.constant 0.000000e+00 : f32
    %14 = vector.broadcast %cst_12 : f32 to vector<8x128xf32>
    %15 = arith.maximumf %13, %14 : vector<8x128xf32>
    %c40 = arith.constant 40 : index
    %c0_13 = arith.constant 0 : index
    %16 = vector.load %arg4[%c40, %c0_13] : memref<48x128xf32, #tpu.memory_space<vmem>>, vector<1x128xf32>
    %17 = vector.broadcast %16 : vector<1x128xf32> to vector<8x128xf32>
    %18 = arith.mulf %15, %17 : vector<8x128xf32>
    %cst_14 = arith.constant dense<0.000000e+00> : vector<8xf32>
    %19 = vector.multi_reduction <add>, %18, %cst_14 [1] : vector<8x128xf32> to vector<8xf32>
    %c0_15 = arith.constant 0 : index
    %c0_16 = arith.constant 0 : index
    %20 = memref.load %arg5[%c0_15, %c0_16] : memref<1x1xf32, #tpu.memory_space<smem>>
    %21 = vector.broadcast %20 : f32 to vector<8xf32>
    %22 = arith.addf %19, %21 : vector<8xf32>
    %c0_17 = arith.constant 0 : index
    %c0_18 = arith.constant 0 : index
    %23 = vector.load %arg6[%c0_17, %c0_18] : memref<1x8xf32, #tpu.memory_space<vmem>>, vector<1x8xf32>
    %24 = vector.shape_cast %23 : vector<1x8xf32> to vector<8xf32>
    %25 = vector.shape_cast %22 : vector<8xf32> to vector<1x8xf32>
    tpu.vector_store %arg6[%c0_17, %c0_18], %25 {strides = array<i32>} : memref<1x8xf32, #tpu.memory_space<vmem>>, vector<1x8xf32>,
    return
  }
  func.func @transform_0(%arg0: i32) -> (i32, i32) {
    %c0_i32 = arith.constant 0 : i32
    %c0_i32_0 = arith.constant 0 : i32
    return %arg0, %c0_i32 : i32, i32
  }
  func.func @transform_1(%arg0: i32) -> (i32, i32) {
    %c0_i32 = arith.constant 0 : i32
    %c0_i32_0 = arith.constant 0 : i32
    return %arg0, %c0_i32 : i32, i32
  }
  func.func @transform_2(%arg0: i32) -> (i32, i32) {
    %c0_i32 = arith.constant 0 : i32
    %c0_i32_0 = arith.constant 0 : i32
    return %arg0, %c0_i32 : i32, i32
  }
  func.func @transform_3(%arg0: i32) -> (i32, i32) {
    %c0_i32 = arith.constant 0 : i32
    %c0_i32_0 = arith.constant 0 : i32
    %c0_i32_1 = arith.constant 0 : i32
    return %c0_i32, %c0_i32_0 : i32, i32
  }
  func.func @transform_4(%arg0: i32) -> (i32, i32) {
    %c0_i32 = arith.constant 0 : i32
    %c0_i32_0 = arith.constant 0 : i32
    %c0_i32_1 = arith.constant 0 : i32
    return %c0_i32, %c0_i32_0 : i32, i32
  }
  func.func @transform_5(%arg0: i32) -> (i32, i32) {
    %c0_i32 = arith.constant 0 : i32
    %c0_i32_0 = arith.constant 0 : i32
    return %c0_i32, %arg0 : i32, i32
  }
}

</mosaic_0001>

<bundles_post_ra>
// kernel: tpu_custom_call.1
= control target key start
LH: loop header
LB: loop body
LE: loop exit
PB: predicated region body
PF: predicated region fallthrough
CT: control target
= control target key end

     0   :  { %11 = vsyncpa [#allocation4], 0  ;;  %s275_s0 = inlined_call_operand.vmem [shape: f32[8,16], index: 0, kind: input, shape index: {}]   ;;  %s276_s1 = inlined_call_operand.vmem [shape: f32[8,4], index: 1, kind: input, shape index: {}]   ;;  %s277_s2 = inlined_call_operand.vmem [shape: f32[8,4], index: 2, kind: input, shape index: {}]   ;;  %s278_s3 = inlined_call_operand.hbm [shape: f32[48,128], index: 3, kind: input, shape index: {}]   ;;  %s279_s4 = inlined_call_operand.<no memory space> [shape: f32[1,1], index: 4, kind: input, shape index: {}]   ;;  %s280_s5 = inlined_call_operand.hbm [shape: f32[1,8], index: 5, kind: output, shape index: {}]  }
   0x1   :  { %12 = vsyncpa [#allocation5], 0  ;;  %s23_s20 = sshll.u32 %s278_s3, 4  ;;  %s223_s21 = smov [#allocation3]   ;;  %s24_s20 = int_to_ptr.hbm [resolvable:$true] %s23_s20 }
   0x2   :  { %s25_s22 = sshll.u32 %s223_s21, 4  ;;  %s224_s23 = smov 128   ;;  %s26_s22 = int_to_ptr.vmem [resolvable:$true] %s25_s22 }
   0x3   :  { %s225_s24 = smov 8  }
   0x4   :  { %31 = dma.hbm_to_vmem [thread:$0]  %s24_s20, 768, %s26_s22, [#allocation4], %s224_s23, %s224_s23, %s225_s24  }
   0x5   :  { %219 = dma.done.wait [#allocation4], 768  }
   0x6   :  { %220 = vsyncadd [#allocation4], 4294966528  ;;  %vm48_vm0 = vcmask 1043456   ;;  %vm44_vm1 = vcmask 31744   ;;  %v96_v0 = vld [vmem:[#allocation3 + $0x18] sm:$0xf]  ;;  %v137_v17 = vlaneseq  ;;  %v134_v18 = vstv %s279_s4 }
   0x7   :  { %v40_v1 = vld [vmem:[%s277_s2] sm:$0xff]  ;;  %v42_v2 = vld [vmem:[#allocation3 + $0x8] sm:$0xff]  ;;  %163 = vmatpush.msk.msra.mxu2 %vm48_vm0, %v96_v0  ;;  %v43_v3 = vld [vmem:[#allocation3 + $0x10] sm:$0xf]  ;;  %vm72_vm2 = vcmask 130048   ;;  %s150_s8 = sshll.u32 %s280_s5, 4  ;;  %s151_s8 = int_to_ptr.hbm [resolvable:$true] %s150_s8 }
   0x8   :  { %90 = vmatpush.msra.mxu1 %v42_v2  ;;  %v41_v4 = vld [vmem:[#allocation3] sm:$0xff]  ;;  %164 = vmatmul.msk.f32.vlgmr.msra.gmra.mxu2 %vm44_vm1, %v40_v1  ;;  %v170_v14 = vld [vmem:[#allocation3 + $0x28] ss:$0 sm:$0xff]  ;;  %v138_v19 = vand.u32 127, %v137_v17  ;;  %vm141_vm3 = vcmask 57344  }
   0x9   :  { %v39_v5 = vld [vmem:[%s276_s1] sm:$0xff]  ;;  %160 = vmatpush.msk.msra.mxu0 %vm48_vm0, %v43_v3 }
   0xa   :  { %v38_v6 = vld [vmem:[%s275_s0] sm:$0xff]  ;;  %91 = vmatpush.msra.mxu1 %v41_v4  ;;  %161 = vmatmul.msk.f32.vlgmr.msra.gmra.mxu0 %vm44_vm1, %v39_v5  ;;  %s226_s0 = smov [#allocation6]  }
   0xb   :  { %162 = vmatmul.msk.f32.vlgmr.msra.gmra.mxu1 %vm72_vm2, %v38_v6  ;;  %v169_v10 = vld [vmem:[#allocation3 + $0x20] ss:$0 sm:$0xff]  ;;  %s148_s30 = sshll.u32 %s226_s0, 4  ;;  %s149_s30 = int_to_ptr.vmem [resolvable:$true] %s148_s30 }
  0x87   :  { %v69_v7 = vpop.f32.mrf.mxu0 }
  0x88   :  { %v93_v8 = vpop.f32.mrf.mxu1 }
  0x89   :  { %v94_v9 = vadd.f32 %v93_v8, %v69_v7 }
  0x8b   :  { %v120_v11 = vpop.f32.mrf.mxu2 }
  0x8c   :  { %v123_v12 = vadd.f32 %v120_v11, %v94_v9 }
  0x8e   :  { %v126_v13 = vadd.f32 %v169_v10, %v123_v12 }
  0x90   :  { %v127_v15 = vmax.f32 %v126_v13, 0.0 }
  0x92   :  { %v130_v16 = vmul.f32 %v170_v14, %v127_v15 }
  0x94   :  { %131 = vadd.xlane.f32.xlu0 %v130_v16 }
 0x107   :  { %v132_v20 = vpop.xlane.xlu0 %131 }
 0x108   :  { %v135_v21 = vadd.f32 %v134_v18, %v132_v20 }
 0x10a   :  { %v139_v22 = vperm.slane %v135_v21, %v138_v19 }
 0x10c   :  { %142 = vst.msk [vmem:[#allocation6] sm:$0x1] %vm141_vm3, %v139_v22 }
 0x10d   :  { %153 = dma.vmem_to_hbm [thread:$0]  %s149_s30, 16, %s151_s8, [#allocation5]  }
 0x10e   :  { %221 = dma.done.wait [#allocation5], 16  }
 0x10f   :  { %222 = vsyncadd [#allocation5], 4294967280 }
 0x110   :  { %158 = vsyncpa [#allocation4], 1 }
 0x111   :  { %159 = vsyncpa [#allocation5], 1 }

</bundles_post_ra>
